<compile_context>
chip_gen: v5e
topology: v5e:2x2
jax: 0.10.0
libtpu: 0.0.40
codegen_flags: <defaults>
</compile_context>

<pallas_src>
import functools

import jax
import jax.numpy as jnp
from jax.experimental import pallas as pl
from jax.experimental.pallas import tpu as pltpu

_MiB = 1024 * 1024


def _round_up(v, m):
    return ((v + m - 1) // m) * m


def _tpu_vmem_and_cores():
    """Per-TensorCore VMEM capacity (bytes) and TensorCores per chip, with safe fallbacks."""
    kind = ""
    try:
        kind = jax.devices()[0].device_kind.lower()
    except Exception:
        pass
    is_v7 = ("v7" in kind) or ("7x" in kind)

    vmem = None
    try:
        vmem = int(pltpu.get_tpu_info().vmem_capacity_bytes)
    except Exception:
        vmem = None
    if vmem is None:
        if is_v7:
            vmem = 64 * _MiB
        elif ("v5" in kind) or ("v6" in kind):
            vmem = 128 * _MiB
        else:
            vmem = 64 * _MiB  # unknown part: stay conservative
    if is_v7:
        vmem = min(vmem, 64 * _MiB)  # v7x VMEM is per-TensorCore

    cores = 2 if is_v7 else 1
    return vmem, cores


def _gemv_reduce_kernel(x_ref, w_ref, o_ref):
    # x_ref: (tm, hidden)   w_ref: (1, hidden) lane-dense   o_ref: (tm, 1)
    x = x_ref[...].astype(jnp.float32)
    w = w_ref[...].astype(jnp.float32)
    # VPU elementwise multiply + XLU lane reduce; f32 accumulation.
    o_ref[...] = jnp.sum(x * w, axis=-1, keepdims=True).astype(o_ref.dtype)


def _gemv_packed_kernel(x_ref, w_ref, o_ref, *, hidden, k):
    # x_ref: (tm, k*hidden == 128) — k logical rows packed per 128-lane row.
    # w_ref: (1, 128) — the weight row tiled k times.
    # o_ref: (tm, k)  — column i = <logical row i of this packed row, weight>.
    prod = x_ref[...].astype(jnp.float32) * w_ref[...].astype(jnp.float32)
    lane = jax.lax.broadcasted_iota(jnp.int32, prod.shape, dimension=1)
    for i in range(k):  # static unroll; k <= 16
        seg = (lane >= i * hidden) & (lane < (i + 1) * hidden)
        part = jnp.sum(jnp.where(seg, prod, 0.0), axis=-1, keepdims=True)
        o_ref[:, i:i + 1] = part.astype(o_ref.dtype)


def pre_difficulty_forward(x, weight, *, vmem_limit_bytes=None):
    """y = x @ weight.T   (weight shape (1, hidden), like nn.Linear(hidden, 1, bias=False))."""
    *lead, hidden = x.shape
    assert weight.shape == (1, hidden)

    m = 1
    for d in lead:
        m *= d
    x2d = x.reshape(m, hidden)
    itemsize = jnp.dtype(x.dtype).itemsize

    vmem_cap, cores = _tpu_vmem_and_cores()
    if vmem_limit_bytes is None:
        # 3/4 of physical VMEM, capped: 96 MiB on v5e/v6e, 48 MiB on v7x.
        vmem_limit_bytes = min(vmem_cap * 3 // 4, 96 * _MiB)
    vmem_limit_bytes = int(vmem_limit_bytes)

    # ---- lane packing for small hidden -------------------------------------
    k = 128 // hidden if (hidden < 128 and 128 % hidden == 0) else 1
    if 1 < k <= 16 and m % k == 0:
        m_rows = m // k
        hidden_eff = k * hidden                      # == 128 lanes, fully dense
        x_rows = x2d.reshape(m_rows, hidden_eff)     # free row-major re-view
        w_op = jnp.tile(weight, (1, k))              # (1, 128)
        kernel = functools.partial(_gemv_packed_kernel, hidden=hidden, k=k)
        out_cols = k
        w_spec = pl.BlockSpec((1, hidden_eff), lambda i: (0, 0))
    else:
        k = 1
        m_rows = m
        hidden_eff = hidden
        x_rows = x2d
        w_op = weight                                # (1, hidden), lane-dense
        kernel = _gemv_reduce_kernel
        out_cols = 1
        w_spec = pl.BlockSpec((1, hidden), lambda i: (0, 0))

    # ---- row-tile sizing (generation aware) ---------------------------------
    hidden_vmem = _round_up(hidden_eff, 128)         # lane padding in VMEM
    per_tile_cap = max(vmem_cap // 4, 8 * _MiB)      # per x buffer: 32 MiB v5e/v6e, 16 MiB v7x
    headroom = 6 * _MiB                              # weight + compiler scratch
    # double-buffered x tile + double-buffered output tile (lane-padded to 128)
    per_row_bytes = 2 * hidden_vmem * itemsize + 2 * 128 * itemsize
    tm_total = (vmem_limit_bytes - headroom) // per_row_bytes
    tm_tile = per_tile_cap // max(1, hidden_vmem * itemsize)

    if m_rows < 8:
        tm = m_rows                                  # full-extent block
    else:
        tm = min(tm_total, tm_tile, 16384, (m_rows // 8) * 8)
        if cores >= 2 and m_rows >= 16:
            # v7x: ensure >= 2 grid steps so both TensorCores get work.
            tm = min(tm, _round_up(-(-m_rows // 2), 8))
        tm = max(8, (tm // 8) * 8)

    grid = (pl.cdiv(m_rows, tm),)

    out_rows = pl.pallas_call(
        kernel,
        out_shape=jax.ShapeDtypeStruct((m_rows, out_cols), x.dtype),
        grid_spec=pltpu.PrefetchScalarGridSpec(
            num_scalar_prefetch=0,
            grid=grid,
            in_specs=[
                # x: streamed row tiles, double-buffered by the Pallas pipeline.
                pl.BlockSpec((tm, hidden_eff), lambda i: (i, 0)),
                # weight: constant index -> stays resident in VMEM.
                w_spec,
            ],
            out_specs=pl.BlockSpec((tm, out_cols), lambda i: (i, 0)),
        ),
        compiler_params=pltpu.CompilerParams(
            dimension_semantics=("parallel",),       # row tiles are independent
            vmem_limit_bytes=vmem_limit_bytes,
        ),
    )(x_rows, w_op)

    # (m_rows, k) row-major == flat (m,) logical row order.
    return out_rows.reshape(*lead, 1)


if __name__ == "__main__":
    key = jax.random.PRNGKey(0)
    kx, kw = jax.random.split(key)

    # Primary test (shapes implied by the module): hidden=32 -> lane-packed path.
    batch, seq, hidden = 2, 8, 32
    x = jax.random.normal(kx, (batch, seq, hidden), dtype=jnp.float32)
    weight = jax.random.normal(kw, (1, hidden), dtype=jnp.float32) * (1.0 / hidden ** 0.5)

    y = jax.block_until_ready(pre_difficulty_forward(x, weight))
    y_ref = jnp.matmul(x, weight.T, precision=jax.lax.Precision.HIGHEST)
    assert y.shape == (batch, seq, 1)
    assert jnp.allclose(y, y_ref, atol=1e-5, rtol=1e-5)

    # Secondary smoke test: hidden multiple of 128 -> streaming lane-reduce path.
    hidden2 = 256
    kx2, kw2 = jax.random.split(jax.random.PRNGKey(1))
    x2 = jax.random.normal(kx2, (batch, seq, hidden2), dtype=jnp.float32)
    w2 = jax.random.normal(kw2, (1, hidden2), dtype=jnp.float32) * (1.0 / hidden2 ** 0.5)
    y2 = jax.block_until_ready(pre_difficulty_forward(x2, w2))
    y2_ref = jnp.matmul(x2, w2.T, precision=jax.lax.Precision.HIGHEST)
    assert y2.shape == (batch, seq, 1)
    assert jnp.allclose(y2, y2_ref, atol=1e-5, rtol=1e-5)

    print("KERNEL_OK")
</pallas_src>

<mosaic_0001>
module attributes {stable_mosaic.version = 11 : i64} {
  func.func @_gemv_packed_kernel(%arg0: i32, %arg1: memref<4x128xf32, #tpu.memory_space<vmem>>, %arg2: memref<1x128xf32, #tpu.memory_space<vmem>>, %arg3: memref<4x4xf32, #tpu.memory_space<vmem>>) attributes {dimension_semantics = [#tpu.dimension_semantics<parallel>], iteration_bounds = array<i64: 1>, scalar_prefetch = 0 : i64, scratch_operands = 0 : i64, tpu.core_type = #tpu.core_type<tc>, window_params = [{transform_indices = @transform_0, window_bounds = array<i64: 4, 128>}, {pipeline_mode = #tpu.pipeline_mode<synchronous>, transform_indices = @transform_1, window_bounds = array<i64: 1, 128>}, {transform_indices = @transform_2, window_bounds = array<i64: 4, 4>}]} {
    %c0 = arith.constant 0 : index
    %c0_0 = arith.constant 0 : index
    %0 = vector.load %arg1[%c0, %c0_0] : memref<4x128xf32, #tpu.memory_space<vmem>>, vector<4x128xf32>
    %c0_1 = arith.constant 0 : index
    %c0_2 = arith.constant 0 : index
    %1 = vector.load %arg2[%c0_1, %c0_2] : memref<1x128xf32, #tpu.memory_space<vmem>>, vector<1x128xf32>
    %2 = vector.broadcast %1 : vector<1x128xf32> to vector<4x128xf32>
    %3 = arith.mulf %0, %2 : vector<4x128xf32>
    %4 = tpu.iota {dimensions = array<i32: 1>} : vector<4x128xi32>
    %c0_i32 = arith.constant 0 : i32
    %5 = vector.broadcast %c0_i32 : i32 to vector<4x128xi32>
    %6 = arith.cmpi sge, %4, %5 : vector<4x128xi32>
    %c32_i32 = arith.constant 32 : i32
    %7 = vector.broadcast %c32_i32 : i32 to vector<4x128xi32>
    %8 = arith.cmpi slt, %4, %7 : vector<4x128xi32>
    %9 = arith.andi %6, %8 : vector<4x128xi1>
    %cst = arith.constant 0.000000e+00 : f32
    %10 = vector.broadcast %cst : f32 to vector<4x128xf32>
    %11 = arith.select %9, %3, %10 : vector<4x128xi1>, vector<4x128xf32>
    %cst_3 = arith.constant dense<0.000000e+00> : vector<4xf32>
    %12 = vector.multi_reduction <add>, %11, %cst_3 [1] : vector<4x128xf32> to vector<4xf32>
    %13 = vector.shape_cast %12 : vector<4xf32> to vector<4x1xf32>
    %c0_4 = arith.constant 0 : index
    %c0_5 = arith.constant 0 : index
    %14 = vector.load %arg3[%c0_4, %c0_5] : memref<4x4xf32, #tpu.memory_space<vmem>>, vector<4x1xf32>
    tpu.vector_store %arg3[%c0_4, %c0_5], %13 {strides = array<i32>} : memref<4x4xf32, #tpu.memory_space<vmem>>, vector<4x1xf32>,
    %c32_i32_6 = arith.constant 32 : i32
    %15 = vector.broadcast %c32_i32_6 : i32 to vector<4x128xi32>
    %16 = arith.cmpi sge, %4, %15 : vector<4x128xi32>
    %c64_i32 = arith.constant 64 : i32
    %17 = vector.broadcast %c64_i32 : i32 to vector<4x128xi32>
    %18 = arith.cmpi slt, %4, %17 : vector<4x128xi32>
    %19 = arith.andi %16, %18 : vector<4x128xi1>
    %cst_7 = arith.constant 0.000000e+00 : f32
    %20 = vector.broadcast %cst_7 : f32 to vector<4x128xf32>
    %21 = arith.select %19, %3, %20 : vector<4x128xi1>, vector<4x128xf32>
    %cst_8 = arith.constant dense<0.000000e+00> : vector<4xf32>
    %22 = vector.multi_reduction <add>, %21, %cst_8 [1] : vector<4x128xf32> to vector<4xf32>
    %23 = vector.shape_cast %22 : vector<4xf32> to vector<4x1xf32>
    %c0_9 = arith.constant 0 : index
    %c1 = arith.constant 1 : index
    %24 = vector.load %arg3[%c0_9, %c1] : memref<4x4xf32, #tpu.memory_space<vmem>>, vector<4x1xf32>
    tpu.vector_store %arg3[%c0_9, %c1], %23 {strides = array<i32>} : memref<4x4xf32, #tpu.memory_space<vmem>>, vector<4x1xf32>,
    %c64_i32_10 = arith.constant 64 : i32
    %25 = vector.broadcast %c64_i32_10 : i32 to vector<4x128xi32>
    %26 = arith.cmpi sge, %4, %25 : vector<4x128xi32>
    %c96_i32 = arith.constant 96 : i32
    %27 = vector.broadcast %c96_i32 : i32 to vector<4x128xi32>
    %28 = arith.cmpi slt, %4, %27 : vector<4x128xi32>
    %29 = arith.andi %26, %28 : vector<4x128xi1>
    %cst_11 = arith.constant 0.000000e+00 : f32
    %30 = vector.broadcast %cst_11 : f32 to vector<4x128xf32>
    %31 = arith.select %29, %3, %30 : vector<4x128xi1>, vector<4x128xf32>
    %cst_12 = arith.constant dense<0.000000e+00> : vector<4xf32>
    %32 = vector.multi_reduction <add>, %31, %cst_12 [1] : vector<4x128xf32> to vector<4xf32>
    %33 = vector.shape_cast %32 : vector<4xf32> to vector<4x1xf32>
    %c0_13 = arith.constant 0 : index
    %c2 = arith.constant 2 : index
    %34 = vector.load %arg3[%c0_13, %c2] : memref<4x4xf32, #tpu.memory_space<vmem>>, vector<4x1xf32>
    tpu.vector_store %arg3[%c0_13, %c2], %33 {strides = array<i32>} : memref<4x4xf32, #tpu.memory_space<vmem>>, vector<4x1xf32>,
    %c96_i32_14 = arith.constant 96 : i32
    %35 = vector.broadcast %c96_i32_14 : i32 to vector<4x128xi32>
    %36 = arith.cmpi sge, %4, %35 : vector<4x128xi32>
    %c128_i32 = arith.constant 128 : i32
    %37 = vector.broadcast %c128_i32 : i32 to vector<4x128xi32>
    %38 = arith.cmpi slt, %4, %37 : vector<4x128xi32>
    %39 = arith.andi %36, %38 : vector<4x128xi1>
    %cst_15 = arith.constant 0.000000e+00 : f32
    %40 = vector.broadcast %cst_15 : f32 to vector<4x128xf32>
    %41 = arith.select %39, %3, %40 : vector<4x128xi1>, vector<4x128xf32>
    %cst_16 = arith.constant dense<0.000000e+00> : vector<4xf32>
    %42 = vector.multi_reduction <add>, %41, %cst_16 [1] : vector<4x128xf32> to vector<4xf32>
    %43 = vector.shape_cast %42 : vector<4xf32> to vector<4x1xf32>
    %c0_17 = arith.constant 0 : index
    %c3 = arith.constant 3 : index
    %44 = vector.load %arg3[%c0_17, %c3] : memref<4x4xf32, #tpu.memory_space<vmem>>, vector<4x1xf32>
    tpu.vector_store %arg3[%c0_17, %c3], %43 {strides = array<i32>} : memref<4x4xf32, #tpu.memory_space<vmem>>, vector<4x1xf32>,
    return
  }
  func.func @transform_0(%arg0: i32) -> (i32, i32) {
    %c0_i32 = arith.constant 0 : i32
    %c0_i32_0 = arith.constant 0 : i32
    return %arg0, %c0_i32 : i32, i32
  }
  func.func @transform_1(%arg0: i32) -> (i32, i32) {
    %c0_i32 = arith.constant 0 : i32
    %c0_i32_0 = arith.constant 0 : i32
    %c0_i32_1 = arith.constant 0 : i32
    return %c0_i32, %c0_i32_0 : i32, i32
  }
  func.func @transform_2(%arg0: i32) -> (i32, i32) {
    %c0_i32 = arith.constant 0 : i32
    %c0_i32_0 = arith.constant 0 : i32
    return %arg0, %c0_i32 : i32, i32
  }
}

</mosaic_0001>

<bundles_post_ra>
// kernel: tpu_custom_call.1
= control target key start
LH: loop header
LB: loop body
LE: loop exit
PB: predicated region body
PF: predicated region fallthrough
CT: control target
= control target key end

     0   :  { %7 = vsyncpa [#allocation3], 0  ;;  %s212_s0 = inlined_call_operand.hbm [shape: f32[4,128], index: 0, kind: input, shape index: {}]   ;;  %s213_s1 = inlined_call_operand.hbm [shape: f32[1,128], index: 1, kind: input, shape index: {}]   ;;  %s214_s2 = inlined_call_operand.hbm [shape: f32[4,4], index: 2, kind: output, shape index: {}]  }
   0x1   :  { %8 = vsyncpa [#allocation6], 0 }
   0x2   :  { %9 = vsyncpa [#allocation4], 0  ;;  %s15_s11 = sshll.u32 %s212_s0, 4  ;;  %s185_s12 = smov [#allocation2]   ;;  %s16_s11 = int_to_ptr.hbm [resolvable:$true] %s15_s11 }
   0x3   :  { %s17_s13 = sshll.u32 %s185_s12, 4  ;;  %s26_s16 = sshll.u32 %s213_s1, 4  ;;  %s18_s13 = int_to_ptr.vmem [resolvable:$true] %s17_s13  ;;  %s27_s16 = int_to_ptr.hbm [resolvable:$true] %s26_s16 }
   0x4   :  { %20 = dma.hbm_to_vmem [thread:$0]  %s16_s11, 64, %s18_s13, [#allocation3]  }
   0x5   :  { %s186_s17 = smov [#allocation5]  }
   0x6   :  { %s28_s18 = sshll.u32 %s186_s17, 4  ;;  %s29_s18 = int_to_ptr.vmem [resolvable:$true] %s28_s18 }
   0x7   :  { %31 = dma.hbm_to_vmem [thread:$0]  %s27_s16, 16, %s29_s18, [#allocation6]  }
   0x8   :  { %179 = dma.done.wait [#allocation3], 64  }
   0x9   :  { %180 = vsyncadd [#allocation3], 4294967232 }
   0xa   :  { %181 = dma.done.wait [#allocation6], 16  }
   0xb   :  { %182 = vsyncadd [#allocation6], 4294967280  ;;  %v46_v0 = vlaneseq  ;;  %v40_v2 = vld [vmem:[#allocation2] sm:$0xf]  ;;  %v106_v3 = vld [vmem:[#allocation5] ss:$0 sm:$0xff] }
   0xc   :  { %v45_v4 = vmul.f32 %v106_v3, %v40_v2  ;;  %vm52_vm4 = vcmask 1043456   ;;  %vm56_vm9 = vcmask 3072   ;;  %vm65_vm10 = vcmask 11272   ;;  %s187_s0 = smov [#allocation7]   ;;  %s92_s21 = sshll.u32 %s214_s2, 4  ;;  %s93_s21 = int_to_ptr.hbm [resolvable:$true] %s92_s21 }
   0xd   :  { %v47_v1 = vand.u32 127, %v46_v0  ;;  %s90_s1 = sshll.u32 %s187_s0, 4  ;;  %vm74_vm11 = vcmask 19472   ;;  %vm83_vm12 = vcmask 27672   ;;  %s91_s1 = int_to_ptr.vmem [resolvable:$true] %s90_s1 }
   0xf   :  { %vm67_vm0 = vcmp.ge.s32.totalorder %v47_v1, 64  ;;  %vm68_vm1 = vcmp.lt.s32.totalorder %v47_v1, 96  ;;  %vm49_vm2 = vcmp.lt.s32.totalorder %v47_v1, 32  ;;  %vm58_vm5 = vcmp.ge.s32.totalorder %v47_v1, 32 }
  0x10   :  { %vm69_vm3 = vmand %vm67_vm0, %vm68_vm1  ;;  %vm59_vm6 = vcmp.lt.s32.totalorder %v47_v1, 64  ;;  %v51_v5 = vsel %vm49_vm2, %v45_v4, 0.0  ;;  %vm76_vm8 = vcmp.ge.s32.totalorder %v47_v1, 96 }
  0x11   :  { %v70_v6 = vsel %vm69_vm3, %v45_v4, 0.0  ;;  %v53_v7 = vsel %vm52_vm4, %v51_v5, 0.0  ;;  %vm60_vm7 = vmand %vm58_vm5, %vm59_vm6  ;;  %v79_v10 = vsel %vm76_vm8, %v45_v4, 0.0 }
  0x12   :  { %v71_v8 = vsel %vm52_vm4, %v70_v6, 0.0  ;;  %54 = vadd.xlane.f32.xlu0 %v53_v7  ;;  %v61_v9 = vsel %vm60_vm7, %v45_v4, 0.0  ;;  %v80_v12 = vsel %vm52_vm4, %v79_v10, 0.0 }
  0x13   :  { %72 = vadd.xlane.f32.xlu1 %v71_v8  ;;  %v62_v11 = vsel %vm52_vm4, %v61_v9, 0.0 }
  0x1a   :  { %63 = vadd.xlane.f32.xlu0 %v62_v11 }
  0x1b   :  { %81 = vadd.xlane.f32.xlu1 %v80_v12 }
  0x85   :  { %v55_v13 = vpop.xlane.xlu0 %54 }
  0x86   :  { %v73_v14 = vpop.xlane.xlu1 %72  ;;  %57 = vst.msk [vmem:[#allocation7] sm:$0xf] %vm56_vm9, %v55_v13 }
  0x8d   :  { %v64_v15 = vpop.xlane.xlu0 %63 }
  0x8e   :  { %v82_v16 = vpop.xlane.xlu1 %81  ;;  %66 = vst.msk [vmem:[#allocation7] sm:$0xf] %vm65_vm10, %v64_v15 }
  0x8f   :  { %75 = vst.msk [vmem:[#allocation7] sm:$0xf] %vm74_vm11, %v73_v14 }
  0x90   :  { %84 = vst.msk [vmem:[#allocation7] sm:$0xf] %vm83_vm12, %v82_v16 }
  0x91   :  { %95 = dma.vmem_to_hbm [thread:$0]  %s91_s1, 64, %s93_s21, [#allocation4]  }
  0x92   :  { %183 = dma.done.wait [#allocation4], 64  }
  0x93   :  { %184 = vsyncadd [#allocation4], 4294967232 }
  0x94   :  { %100 = vsyncpa [#allocation3], 1 }
  0x95   :  { %101 = vsyncpa [#allocation6], 1 }
  0x96   :  { %102 = vsyncpa [#allocation4], 1 }

</bundles_post_ra>
